<compile_context>
chip_gen: v5e
topology: v5e:2x2
jax: 0.10.0
libtpu: 0.0.40
codegen_flags: <defaults>
</compile_context>

<pallas_src>
import jax
import jax.numpy as jnp
from jax.experimental import pallas as pl
from jax.experimental.pallas import tpu as pltpu

# Small, deterministic problem sizes consistent with the module's forward:
B = 2     # batch
C = 16    # input_size  (feature dim of x before the transpose)
S = 8     # sequence / spatial length
H = 32    # hidden_size
O = 8     # output_size


def mlp_kernel(x_ref, w1_ref, b1_ref, w2_ref, b2_ref, w3_ref, b3_ref, o_ref):
    # x_ref: (B, C, S)  -- features on sublanes, positions on lanes (no transpose).
    x = x_ref[...]
    Bn = x_ref.shape[0]

    # hidden1 + ReLU:  h1[b] = W1 @ x[b]  -> (B, H, S), f32 accumulation on MXU.
    w1b = jnp.broadcast_to(w1_ref[...][None], (Bn,) + w1_ref.shape)       # (B, H, C)
    h1 = jnp.einsum('bhc,bcs->bhs', w1b, x,
                    preferred_element_type=jnp.float32)                   # (B, H, S)
    h1 = jnp.maximum(h1 + b1_ref[...], 0.0)                               # b1: (H, 1)

    # hidden2 + ReLU:  h2[b] = W2 @ h1[b]  -> (B, O, S)
    w2b = jnp.broadcast_to(w2_ref[...][None], (Bn,) + w2_ref.shape)       # (B, O, H)
    h2 = jnp.einsum('boh,bhs->bos', w2b, h1.astype(w2_ref.dtype),
                    preferred_element_type=jnp.float32)                   # (B, O, S)
    h2 = jnp.maximum(h2 + b2_ref[...], 0.0)

    # output Linear(O -> 1): broadcast multiply + sublane reduce (no N=1 MXU pass).
    out = jnp.sum(h2 * w3_ref[...], axis=1)                               # (B, S)
    o_ref[...] = (out + b3_ref[0]).astype(o_ref.dtype)


def mlp_forward(x, w1, b1, w2, b2, w3, b3, compute_dtype=jnp.float32):
    """x: (B, C, S); w1: (H, C); b1: (H,); w2: (O, H); b2: (O,);
    w3: (1, O); b3: (1,)  ->  (B, S) f32.

    compute_dtype=jnp.bfloat16 is recommended on v6e/v7x for large B*S
    (casts only the matmul operands; accumulation, biases, ReLU stay f32)."""
    Bx, Cx, Sx = x.shape
    Hh = w1.shape[0]
    Oo = w2.shape[0]

    # No transpose of x: (B, C, S) already has positions on the lane axis.
    xk = x.astype(compute_dtype)
    w1k = w1.astype(compute_dtype)                  # (H, C)
    w2k = w2.astype(compute_dtype)                  # (O, H)
    b1c = b1.astype(jnp.float32).reshape(Hh, 1)     # lane-broadcast columns
    b2c = b2.astype(jnp.float32).reshape(Oo, 1)
    w3c = w3.astype(jnp.float32).reshape(Oo, 1)     # (1, O) row -> (O, 1) column
    b3c = b3.astype(jnp.float32).reshape(1)         # scalar, lives in SMEM

    vmem = pl.BlockSpec(memory_space=pltpu.MemorySpace.VMEM)
    smem = pl.BlockSpec(memory_space=pltpu.MemorySpace.SMEM)

    out = pl.pallas_call(
        mlp_kernel,
        out_shape=jax.ShapeDtypeStruct((Bx, Sx), jnp.float32),
        in_specs=[vmem, vmem, vmem, vmem, vmem, vmem, smem],
        out_specs=vmem,
    )(xk, w1k, b1c, w2k, b2c, w3c, b3c)

    return out                                       # (B, S)  == .squeeze(2)


def mlp_reference(x, w1, b1, w2, b2, w3, b3):
    xt = jnp.transpose(x, (0, 2, 1))                 # (B, S, C)
    h1 = jnp.maximum(xt @ w1.T + b1, 0.0)
    h2 = jnp.maximum(h1 @ w2.T + b2, 0.0)
    out = h2 @ w3.T + b3                             # (B, S, 1)
    return out[..., 0]


if __name__ == "__main__":
    key = jax.random.PRNGKey(0)
    k1, k2, k3, k4, k5, k6, k7 = jax.random.split(key, 7)

    x = jax.random.normal(k1, (B, C, S), dtype=jnp.float32)
    w1 = jax.random.normal(k2, (H, C), dtype=jnp.float32) / jnp.sqrt(C)
    b1 = 0.01 * jax.random.normal(k3, (H,), dtype=jnp.float32)
    w2 = jax.random.normal(k4, (O, H), dtype=jnp.float32) / jnp.sqrt(H)
    b2 = 0.01 * jax.random.normal(k5, (O,), dtype=jnp.float32)
    w3 = jax.random.normal(k6, (1, O), dtype=jnp.float32) / jnp.sqrt(O)
    b3 = 0.01 * jax.random.normal(k7, (1,), dtype=jnp.float32)

    out = mlp_forward(x, w1, b1, w2, b2, w3, b3)
    out = jax.block_until_ready(out)

    ref = mlp_reference(x, w1, b1, w2, b2, w3, b3)
    assert out.shape == (B, S), out.shape
    assert jnp.allclose(out, ref, rtol=1e-4, atol=1e-4), (out, ref)

    print("KERNEL_OK")
</pallas_src>

<mosaic_0001>
module attributes {stable_mosaic.version = 11 : i64} {
  func.func @mlp_kernel(%arg0: memref<2x16x8xf32, #tpu.memory_space<vmem>>, %arg1: memref<32x16xf32, #tpu.memory_space<vmem>>, %arg2: memref<32x1xf32, #tpu.memory_space<vmem>>, %arg3: memref<8x32xf32, #tpu.memory_space<vmem>>, %arg4: memref<8x1xf32, #tpu.memory_space<vmem>>, %arg5: memref<8x1xf32, #tpu.memory_space<vmem>>, %arg6: memref<1xf32, #tpu.memory_space<smem>>, %arg7: memref<2x8xf32, #tpu.memory_space<vmem>>) attributes {dimension_semantics = [], scalar_prefetch = 0 : i64, scratch_operands = 0 : i64, tpu.core_type = #tpu.core_type<tc>} {
    %c0 = arith.constant 0 : index
    %c0_0 = arith.constant 0 : index
    %c0_1 = arith.constant 0 : index
    %0 = vector.load %arg0[%c0, %c0_0, %c0_1] : memref<2x16x8xf32, #tpu.memory_space<vmem>>, vector<2x16x8xf32>
    %c0_2 = arith.constant 0 : index
    %c0_3 = arith.constant 0 : index
    %1 = vector.load %arg1[%c0_2, %c0_3] : memref<32x16xf32, #tpu.memory_space<vmem>>, vector<32x16xf32>
    %2 = vector.shape_cast %1 : vector<32x16xf32> to vector<1x32x16xf32>
    %3 = vector.shape_cast %2 : vector<1x32x16xf32> to vector<1x32x16xf32>
    %4 = vector.broadcast %3 : vector<1x32x16xf32> to vector<2x32x16xf32>
    "tpu.trace_start"() <{level = 10 : i32, message = "bhc,bcs->bhs"}> : () -> ()
    %cst = arith.constant dense<0.000000e+00> : vector<2x32x8xf32>
    %5 = tpu.matmul %4, %0, %cst {dimension_numbers = #tpu.dot_dimension_numbers<[2], [1], [1], [2], [0, 0, 0, 1, 1, 2], [0], [0]>} : vector<2x32x16xf32>, vector<2x16x8xf32>, vector<2x32x8xf32> -> vector<2x32x8xf32>
    "tpu.trace_stop"() : () -> ()
    %c0_4 = arith.constant 0 : index
    %c0_5 = arith.constant 0 : index
    %6 = vector.load %arg2[%c0_4, %c0_5] : memref<32x1xf32, #tpu.memory_space<vmem>>, vector<32x1xf32>
    %7 = vector.shape_cast %6 : vector<32x1xf32> to vector<1x32x1xf32>
    %8 = vector.broadcast %7 : vector<1x32x1xf32> to vector<2x32x8xf32>
    %9 = arith.addf %5, %8 : vector<2x32x8xf32>
    %cst_6 = arith.constant 0.000000e+00 : f32
    %10 = vector.broadcast %cst_6 : f32 to vector<2x32x8xf32>
    %11 = arith.maximumf %9, %10 : vector<2x32x8xf32>
    %c0_7 = arith.constant 0 : index
    %c0_8 = arith.constant 0 : index
    %12 = vector.load %arg3[%c0_7, %c0_8] : memref<8x32xf32, #tpu.memory_space<vmem>>, vector<8x32xf32>
    %13 = vector.shape_cast %12 : vector<8x32xf32> to vector<1x8x32xf32>
    %14 = vector.shape_cast %13 : vector<1x8x32xf32> to vector<1x8x32xf32>
    %15 = vector.broadcast %14 : vector<1x8x32xf32> to vector<2x8x32xf32>
    "tpu.trace_start"() <{level = 10 : i32, message = "boh,bhs->bos"}> : () -> ()
    %cst_9 = arith.constant dense<0.000000e+00> : vector<2x8x8xf32>
    %16 = tpu.matmul %15, %11, %cst_9 {dimension_numbers = #tpu.dot_dimension_numbers<[2], [1], [1], [2], [0, 0, 0, 1, 1, 2], [0], [0]>} : vector<2x8x32xf32>, vector<2x32x8xf32>, vector<2x8x8xf32> -> vector<2x8x8xf32>
    "tpu.trace_stop"() : () -> ()
    %c0_10 = arith.constant 0 : index
    %c0_11 = arith.constant 0 : index
    %17 = vector.load %arg4[%c0_10, %c0_11] : memref<8x1xf32, #tpu.memory_space<vmem>>, vector<8x1xf32>
    %18 = vector.shape_cast %17 : vector<8x1xf32> to vector<1x8x1xf32>
    %19 = vector.broadcast %18 : vector<1x8x1xf32> to vector<2x8x8xf32>
    %20 = arith.addf %16, %19 : vector<2x8x8xf32>
    %cst_12 = arith.constant 0.000000e+00 : f32
    %21 = vector.broadcast %cst_12 : f32 to vector<2x8x8xf32>
    %22 = arith.maximumf %20, %21 : vector<2x8x8xf32>
    %c0_13 = arith.constant 0 : index
    %c0_14 = arith.constant 0 : index
    %23 = vector.load %arg5[%c0_13, %c0_14] : memref<8x1xf32, #tpu.memory_space<vmem>>, vector<8x1xf32>
    %24 = vector.shape_cast %23 : vector<8x1xf32> to vector<1x8x1xf32>
    %25 = vector.broadcast %24 : vector<1x8x1xf32> to vector<2x8x8xf32>
    %26 = arith.mulf %22, %25 : vector<2x8x8xf32>
    %cst_15 = arith.constant dense<0.000000e+00> : vector<2x8xf32>
    %27 = vector.multi_reduction <add>, %26, %cst_15 [1] : vector<2x8x8xf32> to vector<2x8xf32>
    %c0_16 = arith.constant 0 : index
    %28 = memref.load %arg6[%c0_16] : memref<1xf32, #tpu.memory_space<smem>>
    %29 = vector.broadcast %28 : f32 to vector<2x8xf32>
    %30 = arith.addf %27, %29 : vector<2x8xf32>
    %c0_17 = arith.constant 0 : index
    %c0_18 = arith.constant 0 : index
    %31 = vector.load %arg7[%c0_17, %c0_18] : memref<2x8xf32, #tpu.memory_space<vmem>>, vector<2x8xf32>
    tpu.vector_store %arg7[%c0_17, %c0_18], %30 {strides = array<i32>} : memref<2x8xf32, #tpu.memory_space<vmem>>, vector<2x8xf32>,
    return
  }
}

</mosaic_0001>

<bundles_post_ra>
// kernel: tpu_custom_call.1
= control target key start
LH: loop header
LB: loop body
LE: loop exit
PB: predicated region body
PF: predicated region fallthrough
CT: control target
= control target key end

     0   :  { %vm60_vm0 = vcmask 130048   ;;  %s388_s0 = inlined_call_operand.vmem [shape: f32[2,16,8], index: 0, kind: input, shape index: {}]   ;;  %s389_s1 = inlined_call_operand.vmem [shape: f32[32,16], index: 1, kind: input, shape index: {}]   ;;  %s390_s2 = inlined_call_operand.vmem [shape: f32[32,1], index: 2, kind: input, shape index: {}]   ;;  %s391_s3 = inlined_call_operand.vmem [shape: f32[8,32], index: 3, kind: input, shape index: {}]   ;;  %s392_s4 = inlined_call_operand.vmem [shape: f32[8,1], index: 4, kind: input, shape index: {}]   ;;  %s393_s5 = inlined_call_operand.vmem [shape: f32[8,1], index: 5, kind: input, shape index: {}]   ;;  %s394_s6 = inlined_call_operand.<no memory space> [shape: f32[1], index: 6, kind: input, shape index: {}]   ;;  %s395_s7 = inlined_call_operand.hbm [shape: f32[2,8], index: 7, kind: output, shape index: {}]  }
   0x1   :  { %v29_v0 = vld [vmem:[%s388_s0 + $0x8] sm:$0xff]  ;;  %v31_v1 = vld [vmem:[%s388_s0 + $0x18] sm:$0xff]  ;;  %v28_v2 = vld [vmem:[%s388_s0] sm:$0xff] }
   0x2   :  { %87 = vmatpush.msra.mxu0 %v29_v0  ;;  %116 = vmatpush.msra.mxu1 %v31_v1  ;;  %v30_v3 = vld [vmem:[%s388_s0 + $0x10] sm:$0xff]  ;;  %v32_v4 = vld [vmem:[%s389_s1] sm:$0xff]  ;;  %v35_v5 = vld [vmem:[%s389_s1 + $0x18] sm:$0xff] }
   0x3   :  { %252 = vmatpush.msra.mxu2 %v29_v0  ;;  %254 = vmatpush.msra.mxu3 %v31_v1  ;;  %v37_v6 = vld [vmem:[%s390_s2 + $0x8] sm:$0xff] }
   0x4   :  { %88 = vmatpush.msra.mxu0 %v28_v2  ;;  %117 = vmatpush.msra.mxu1 %v30_v3 }
   0x5   :  { %242 = vmatmul.msk.f32.vlgmr.msra.gmra.mxu0 %vm60_vm0, %v32_v4  ;;  %246 = vmatmul.msk.f32.vlgmr.msra.gmra.mxu1 %vm60_vm0, %v32_v4 }
   0x6   :  { %13 = vsyncpa [#allocation4], 0  ;;  %253 = vmatpush.msra.mxu2 %v28_v2  ;;  %255 = vmatpush.msra.mxu3 %v30_v3  ;;  %v287_v7 = vmov 0   ;;  %v39_v8 = vld [vmem:[%s390_s2 + $0x18] sm:$0xff]  ;;  %v33_v9 = vld [vmem:[%s389_s1 + $0x8] sm:$0xff]  ;;  %vm146_vm1 = vcmask 261120   ;;  %v216_v2 = vstv %s394_s6 }
   0x7   :  { %259 = vset.pattern.permute.xlu1 %v287_v7  ;;  %245 = vmatmul.msk.f32.vlgmr.msra.gmra.mxu2 %vm60_vm0, %v35_v5  ;;  %v36_v10 = vld [vmem:[%s390_s2] sm:$0xff]  ;;  %v38_v11 = vld [vmem:[%s390_s2 + $0x10] sm:$0xff]  ;;  %vm200_vm2 = vcmask 64512   ;;  %s233_s8 = sshll.u32 %s395_s7, 4  ;;  %vm221_vm3 = vcmask 1041409   ;;  %vm224_vm4 = vcmask 58368   ;;  %s234_s8 = int_to_ptr.hbm [resolvable:$true] %s233_s8 }
   0x8   :  { %249 = vmatmul.msk.f32.vlgmr.msra.gmra.mxu3 %vm60_vm0, %v35_v5  ;;  %47 = vperm.xlu1 %259, %v37_v6   ;;  %v34_v12 = vld [vmem:[%s389_s1 + $0x10] sm:$0xff]  ;;  %v140_v13 = vld [vmem:[%s392_s4] sm:$0xff] }
   0x9   :  { %258 = vset.pattern.permute.xlu0 %v287_v7  ;;  %260 = vset.pattern.permute.xlu2 %v287_v7  ;;  %v192_v16 = vld [vmem:[%s393_s5] sm:$0xff]  ;;  %s288_s5 = smov [#allocation3]  }
   0xa   :  { %57 = vperm.xlu0 %258, %v39_v8   ;;  %143 = vperm.xlu2 %260, %v140_v13   ;;  %v139_v42 = vld [vmem:[%s391_s3] sm:$0xff]  ;;  %s231_s28 = sshll.u32 %s288_s5, 4  ;;  %s232_s28 = int_to_ptr.vmem [resolvable:$true] %s231_s28 }
   0xd   :  { %243 = vmatmul.msk.f32.gmra.mxu0 %vm60_vm0, %v33_v9  ;;  %247 = vmatmul.msk.f32.gmra.mxu1 %vm60_vm0, %v33_v9 }
  0x10   :  { %42 = vperm.xlu1 %259, %v36_v10  }
  0x12   :  { %52 = vperm.xlu0 %258, %v38_v11   ;;  %195 = vperm.xlu2 %260, %v192_v16  }
  0x15   :  { %244 = vmatmul.msk.f32.gmra.mxu0 %vm60_vm0, %v34_v12  ;;  %248 = vmatmul.msk.f32.gmra.mxu1 %vm60_vm0, %v34_v12 }
  0x64   :  { %v144_v44 = vpop.permute.xlu2 %143 }
  0x6c   :  { %v196_v50 = vpop.permute.xlu2 %195 }
  0x7a   :  { %v48_v17 = vpop.permute.xlu1 %47 }
  0x7c   :  { %v58_v18 = vpop.permute.xlu0 %57 }
  0x82   :  { %v90_v14 = vpop.f32.mrf.mxu0  ;;  %v119_v15 = vpop.f32.mrf.mxu1 }
  0x83   :  { %v43_v27 = vpop.permute.xlu1 %42 }
  0x84   :  { %v53_v28 = vpop.permute.xlu0 %52  ;;  %v91_v35 = vadd.f32 %v90_v14, %v43_v27  ;;  %v120_v37 = vadd.f32 %v119_v15, %v43_v27 }
  0x86   :  { %v131_v41 = vmax.f32 %v91_v35, 0.0  ;;  %v135_v43 = vmax.f32 %v120_v37, 0.0 }
  0x8a   :  { %v93_v19 = vpop.f32.mrf.mxu0  ;;  %v99_v20 = vpop.f32.mrf.mxu2 }
  0x8b   :  { %v100_v21 = vadd.f32 %v99_v20, %v58_v18  ;;  %v122_v22 = vpop.f32.mrf.mxu1  ;;  %v128_v23 = vpop.f32.mrf.mxu3  ;;  %v94_v30 = vadd.f32 %v93_v19, %v48_v17 }
  0x8c   :  { %v129_v24 = vadd.f32 %v128_v23, %v58_v18  ;;  %v123_v33 = vadd.f32 %v122_v22, %v48_v17 }
  0x8d   :  { %v134_v25 = vmax.f32 %v100_v21, 0.0  ;;  %v132_v39 = vmax.f32 %v94_v30, 0.0 }
  0x8e   :  { %v138_v26 = vmax.f32 %v129_v24, 0.0  ;;  %v136_v40 = vmax.f32 %v123_v33, 0.0 }
  0x8f   :  { %162 = vmatpush.msrb.mxu2 %v134_v25 }
  0x90   :  { %182 = vmatpush.msrb.mxu3 %v138_v26 }
  0x92   :  { %v96_v29 = vpop.f32.mrf.mxu0 }
  0x93   :  { %v97_v31 = vadd.f32 %v96_v29, %v53_v28  ;;  %v125_v32 = vpop.f32.mrf.mxu1 }
  0x94   :  { %v126_v34 = vadd.f32 %v125_v32, %v53_v28 }
  0x95   :  { %v133_v36 = vmax.f32 %v97_v31, 0.0 }
  0x96   :  { %v137_v38 = vmax.f32 %v126_v34, 0.0 }
  0x97   :  { %163 = vmatpush.msrb.mxu2 %v133_v36 }
  0x98   :  { %183 = vmatpush.msrb.mxu3 %v137_v38 }
  0x99   :  { %164 = vmatpush.msrb.mxu2 %v132_v39 }
  0x9a   :  { %184 = vmatpush.msrb.mxu3 %v136_v40 }
  0x9b   :  { %165 = vmatpush.msrb.mxu2 %v131_v41 }
  0x9c   :  { %185 = vmatpush.msrb.mxu3 %v135_v43  ;;  %250 = vmatmul.msk.f32.vlgmr.msrb.gmra.mxu2 %vm146_vm1, %v139_v42 }
  0x9d   :  { %251 = vmatmul.msk.f32.vlgmr.msrb.gmra.mxu3 %vm146_vm1, %v139_v42 }
 0x11f   :  { %v167_v45 = vpop.f32.mrf.mxu2 }
 0x120   :  { %v168_v46 = vadd.f32 %v167_v45, %v144_v44  ;;  %v187_v47 = vpop.f32.mrf.mxu3 }
 0x121   :  { %v188_v48 = vadd.f32 %v187_v47, %v144_v44 }
 0x122   :  { %v190_v49 = vmax.f32 %v168_v46, 0.0 }
 0x123   :  { %v191_v51 = vmax.f32 %v188_v48, 0.0 }
 0x124   :  { %v198_v52 = vmul.f32 %v196_v50, %v190_v49 }
 0x125   :  { %v199_v53 = vmul.f32 %v196_v50, %v191_v51 }
 0x126   :  { %v201_v54 = vsel %vm200_vm2, %v198_v52, 0.0 }
 0x127   :  { %v202_v55 = vrot.slane %v201_v54, 4  ;;  %v208_v56 = vsel %vm200_vm2, %v199_v53, 0.0 }
 0x128   :  { %v209_v57 = vrot.slane %v208_v56, 4 }
 0x129   :  { %v203_v58 = vadd.f32 %v202_v55, %v201_v54 }
 0x12a   :  { %v210_v59 = vadd.f32 %v209_v57, %v208_v56 }
 0x12b   :  { %v204_v60 = vrot.slane %v203_v58, 2 }
 0x12c   :  { %v211_v61 = vrot.slane %v210_v59, 2 }
 0x12d   :  { %v205_v62 = vadd.f32 %v204_v60, %v203_v58 }
 0x12e   :  { %v212_v63 = vadd.f32 %v211_v61, %v210_v59 }
 0x12f   :  { %v206_v0 = vrot.slane %v205_v62, 1 }
 0x130   :  { %v213_v1 = vrot.slane %v212_v63, 1 }
 0x131   :  { %v207_v3 = vadd.f32 %v206_v0, %v205_v62 }
 0x132   :  { %v214_v4 = vadd.f32 %v213_v1, %v212_v63 }
 0x133   :  { %v217_v5 = vadd.f32 %v216_v2, %v207_v3 }
 0x134   :  { %v218_v6 = vadd.f32 %v216_v2, %v214_v4 }
 0x136   :  { %v222_v7 = vsel %vm221_vm3, %v218_v6, %v217_v5 }
 0x137   :  { %225 = vst.msk [vmem:[#allocation3] sm:$0x3] %vm224_vm4, %v222_v7 }
 0x138   :  { %236 = dma.vmem_to_hbm [thread:$0]  %s232_s28, 32, %s234_s8, [#allocation4]  }
 0x139   :  { %285 = dma.done.wait [#allocation4], 32  }
 0x13a   :  { %286 = vsyncadd [#allocation4], 4294967264 }
 0x13b   :  { %241 = vsyncpa [#allocation4], 1 }

</bundles_post_ra>
